<compile_context>
chip_gen: v6e
topology: v6e:2x2x1
jax: 0.10.0
libtpu: 0.0.40
codegen_flags: <defaults>
</compile_context>

<pallas_src>
import jax
import jax.numpy as jnp
from jax.experimental import pallas as pl
from jax.experimental.pallas import tpu as pltpu


# PyTorch spec: Linear(3,128) ReLU Linear(128,64) ReLU Linear(64,32) ReLU
#               Linear(32,16) ReLU Linear(16,1)
DIMS = [3, 128, 64, 32, 16, 1]
LANE = 128          # hidden widths zero-padded to 128 (full sublane set of f32 vregs)
TB_MAX = 2048       # max batch tile; at <=2048 default scoped-VMEM limits are fine
                    # on v5e/v6e/v7x (raise vmem_limit_bytes only if you push >=4096)


def mlp_kernel(x_ref,
               w1_ref, b1_ref,
               w2_ref, b2_ref,
               w3_ref, b3_ref,
               w4_ref, b4_ref,
               w5_ref, b5_ref,
               o_ref):
    # Transposed dataflow: one batch tile x [3, TB] -> out [1, TB] per grid step.
    # Activations are [128, TB] (features on sublanes, batch on lanes); weights
    # are stored as W^T with zero-padded rows/cols so padded sublanes stay
    # exactly 0 through bias+ReLU and contribute nothing downstream.
    x = x_ref[...]                                                   # [3, TB] f32

    # Layer 1: [128,3] @ [3,TB] -> [128,TB]; MXU operands in storage dtype (bf16),
    # f32 accumulation, bias+ReLU in f32.
    h = jnp.dot(w1_ref[...], x.astype(w1_ref.dtype),
                preferred_element_type=jnp.float32)
    h = jnp.maximum(h + b1_ref[...], 0.0)                            # [128, TB]

    h = jnp.dot(w2_ref[...], h.astype(w2_ref.dtype),
                preferred_element_type=jnp.float32)
    h = jnp.maximum(h + b2_ref[...], 0.0)                            # rows >= 64 are 0

    h = jnp.dot(w3_ref[...], h.astype(w3_ref.dtype),
                preferred_element_type=jnp.float32)
    h = jnp.maximum(h + b3_ref[...], 0.0)                            # rows >= 32 are 0

    h = jnp.dot(w4_ref[...], h.astype(w4_ref.dtype),
                preferred_element_type=jnp.float32)
    h = jnp.maximum(h + b4_ref[...], 0.0)                            # rows >= 16 are 0

    # Final 16->1 layer on VPU/XLU: broadcast-multiply by the padded w5 column
    # [128,1] and reduce over sublanes -> lane-dense [1, TB] output slab.
    out = jnp.sum(h * w5_ref[...], axis=0, keepdims=True) + b5_ref[...]
    o_ref[...] = out.astype(o_ref.dtype)                             # [1, TB]


def _choose_tb(B, tb_max=TB_MAX):
    """Largest lane-aligned tile <= tb_max that still yields >=2 grid blocks
    whenever B > 128 (keeps both v7x TensorCores busy via the parallel axis)."""
    half = -(-B // 2)                      # ceil(B / 2)
    tb = -(-half // LANE) * LANE           # round up to a lane multiple
    return max(LANE, min(tb, tb_max))


def neural_network_forward(x, padded_params, *, tb=None):
    """x: [B, 3] float32 -> [B, 1] float32."""
    B = x.shape[0]
    if tb is None:
        tb = _choose_tb(B)
    assert tb % LANE == 0, "batch tile must be a multiple of 128 lanes"
    n_blocks = -(-B // tb)                 # ceil div (static Python ints)
    Bp = n_blocks * tb

    # Lane-dense input slab [3, Bp] (layout plumbing; negligible vs. compute).
    xt = x.T
    if Bp != B:
        xt = jnp.pad(xt, ((0, 0), (0, Bp - B)))

    flat = []
    for w, b in padded_params:
        flat.append(w)
        flat.append(b)

    in_specs = [pl.BlockSpec((3, tb), lambda i: (0, i))]
    for arr in flat:
        # Constant block index -> weights/biases fetched once, VMEM-resident.
        in_specs.append(pl.BlockSpec(arr.shape, lambda i: (0, 0)))

    out = pl.pallas_call(
        mlp_kernel,
        out_shape=jax.ShapeDtypeStruct((1, Bp), jnp.float32),
        grid=(n_blocks,),
        in_specs=in_specs,
        out_specs=pl.BlockSpec((1, tb), lambda i: (0, i)),
        compiler_params=pltpu.CompilerParams(
            dimension_semantics=("parallel",)),
    )(xt, *flat)

    # Flat [Bp] view (no lane->sublane relayout), then the trivial [B,1] view
    # to preserve the nn.Module's output shape.
    return out.reshape(-1)[:B][:, None]


def init_params(key):
    """Deterministic init mirroring nn.Linear: weights stored [in, out]."""
    params = []
    for i in range(len(DIMS) - 1):
        fan_in, fan_out = DIMS[i], DIMS[i + 1]
        key, kw, kb = jax.random.split(key, 3)
        bound = 1.0 / (fan_in ** 0.5)       # PyTorch default uniform bound
        w = jax.random.uniform(kw, (fan_in, fan_out), jnp.float32, -bound, bound)
        b = jax.random.uniform(kb, (fan_out,), jnp.float32, -bound, bound)
        params.append((w, b))
    return params


def pad_params(params, matmul_dtype=jnp.bfloat16):
    """Transpose + zero-pad for the kernel layout.

    Layers 1..4: W^T stored [out_pad(=128), in] (in = 3 for layer 1, 128 else)
                 in `matmul_dtype`; bias stored as an f32 [128, 1] column.
    Layer 5:     w5 stored as an f32 [128, 1] column (entries >=16 are 0);
                 bias stored as f32 [1, 1].
    """
    padded = []
    n = len(params)
    for i, (w, b) in enumerate(params):
        fan_in, fan_out = w.shape
        if i == n - 1:
            # 16 -> 1 layer, used on the VPU: column vector over feature sublanes.
            wp = jnp.zeros((LANE, 1), jnp.float32).at[:fan_in, 0].set(w[:, 0])
            bp = b.reshape(1, 1).astype(jnp.float32)
        else:
            in_p = fan_in if i == 0 else LANE     # first layer keeps K=3
            wt = jnp.zeros((LANE, in_p), jnp.float32).at[:fan_out, :fan_in].set(w.T)
            wp = wt.astype(matmul_dtype)
            bp = jnp.zeros((LANE, 1), jnp.float32).at[:fan_out, 0].set(b)
        padded.append((wp, bp))
    return padded


def reference_forward(x, params, matmul_dtype=jnp.float32):
    """Pure-JAX reference replicating the kernel's matmul operand dtype."""
    h = x
    n = len(params)
    for i, (w, b) in enumerate(params):
        if i < n - 1:
            h = jnp.dot(h.astype(matmul_dtype), w.astype(matmul_dtype),
                        preferred_element_type=jnp.float32) + b
            h = jnp.maximum(h, 0.0)
        else:
            h = h @ w + b            # final layer stays f32 in the kernel too
    return h


if __name__ == "__main__":
    key = jax.random.PRNGKey(0)
    key, kx = jax.random.split(key)
    B = 8
    x = jax.random.normal(kx, (B, 3), jnp.float32)

    params = init_params(key)

    # f32-operand path: tight check of the kernel structure.
    out_f32 = neural_network_forward(x, pad_params(params, jnp.float32))
    out_f32 = jax.block_until_ready(out_f32)
    ref_f32 = reference_forward(x, params, jnp.float32)
    assert out_f32.shape == (B, 1)
    assert jnp.allclose(out_f32, ref_f32, atol=1e-4, rtol=1e-4), \
        float(jnp.max(jnp.abs(out_f32 - ref_f32)))

    # bf16-operand path (perf default): compare against a matched bf16 reference.
    out_bf16 = neural_network_forward(x, pad_params(params, jnp.bfloat16))
    out_bf16 = jax.block_until_ready(out_bf16)
    ref_bf16 = reference_forward(x, params, jnp.bfloat16)
    assert out_bf16.shape == (B, 1)
    assert jnp.allclose(out_bf16, ref_bf16, atol=1e-2, rtol=1e-2), \
        float(jnp.max(jnp.abs(out_bf16 - ref_bf16)))

    print("KERNEL_OK")
</pallas_src>

<mosaic_0001>
module attributes {stable_mosaic.version = 11 : i64} {
  func.func @mlp_kernel(%arg0: i32, %arg1: memref<3x128xf32, #tpu.memory_space<vmem>>, %arg2: memref<128x3xf32, #tpu.memory_space<vmem>>, %arg3: memref<128x1xf32, #tpu.memory_space<vmem>>, %arg4: memref<128x128xf32, #tpu.memory_space<vmem>>, %arg5: memref<128x1xf32, #tpu.memory_space<vmem>>, %arg6: memref<128x128xf32, #tpu.memory_space<vmem>>, %arg7: memref<128x1xf32, #tpu.memory_space<vmem>>, %arg8: memref<128x128xf32, #tpu.memory_space<vmem>>, %arg9: memref<128x1xf32, #tpu.memory_space<vmem>>, %arg10: memref<128x1xf32, #tpu.memory_space<vmem>>, %arg11: memref<1x1xf32, #tpu.memory_space<vmem>>, %arg12: memref<1x128xf32, #tpu.memory_space<vmem>>) attributes {dimension_semantics = [#tpu.dimension_semantics<parallel>], iteration_bounds = array<i64: 1>, scalar_prefetch = 0 : i64, scratch_operands = 0 : i64, tpu.core_type = #tpu.core_type<tc>, window_params = [{transform_indices = @transform_0, window_bounds = array<i64: 3, 128>}, {pipeline_mode = #tpu.pipeline_mode<synchronous>, transform_indices = @transform_1, window_bounds = array<i64: 128, 3>}, {pipeline_mode = #tpu.pipeline_mode<synchronous>, transform_indices = @transform_2, window_bounds = array<i64: 128, 1>}, {pipeline_mode = #tpu.pipeline_mode<synchronous>, transform_indices = @transform_3, window_bounds = array<i64: 128, 128>}, {pipeline_mode = #tpu.pipeline_mode<synchronous>, transform_indices = @transform_4, window_bounds = array<i64: 128, 1>}, {pipeline_mode = #tpu.pipeline_mode<synchronous>, transform_indices = @transform_5, window_bounds = array<i64: 128, 128>}, {pipeline_mode = #tpu.pipeline_mode<synchronous>, transform_indices = @transform_6, window_bounds = array<i64: 128, 1>}, {pipeline_mode = #tpu.pipeline_mode<synchronous>, transform_indices = @transform_7, window_bounds = array<i64: 128, 128>}, {pipeline_mode = #tpu.pipeline_mode<synchronous>, transform_indices = @transform_8, window_bounds = array<i64: 128, 1>}, {pipeline_mode = #tpu.pipeline_mode<synchronous>, transform_indices = @transform_9, window_bounds = array<i64: 128, 1>}, {pipeline_mode = #tpu.pipeline_mode<synchronous>, transform_indices = @transform_10, window_bounds = array<i64: 1, 1>}, {transform_indices = @transform_11, window_bounds = array<i64: 1, 128>}]} {
    %c0 = arith.constant 0 : index
    %c0_0 = arith.constant 0 : index
    %0 = vector.load %arg1[%c0, %c0_0] : memref<3x128xf32, #tpu.memory_space<vmem>>, vector<3x128xf32>
    %c0_1 = arith.constant 0 : index
    %c0_2 = arith.constant 0 : index
    %1 = vector.load %arg2[%c0_1, %c0_2] : memref<128x3xf32, #tpu.memory_space<vmem>>, vector<128x3xf32>
    %cst = arith.constant dense<0.000000e+00> : vector<128x128xf32>
    %2 = tpu.matmul %1, %0, %cst {dimension_numbers = #tpu.dot_dimension_numbers<[1], [0], [0], [1], [0, 0, 1, 1], [], []>} : vector<128x3xf32>, vector<3x128xf32>, vector<128x128xf32> -> vector<128x128xf32>
    %c0_3 = arith.constant 0 : index
    %c0_4 = arith.constant 0 : index
    %3 = vector.load %arg3[%c0_3, %c0_4] : memref<128x1xf32, #tpu.memory_space<vmem>>, vector<128x1xf32>
    %4 = vector.broadcast %3 : vector<128x1xf32> to vector<128x128xf32>
    %5 = arith.addf %2, %4 : vector<128x128xf32>
    %cst_5 = arith.constant 0.000000e+00 : f32
    %6 = vector.broadcast %cst_5 : f32 to vector<128x128xf32>
    %7 = arith.maximumf %5, %6 : vector<128x128xf32>
    %c0_6 = arith.constant 0 : index
    %c0_7 = arith.constant 0 : index
    %8 = vector.load %arg4[%c0_6, %c0_7] : memref<128x128xf32, #tpu.memory_space<vmem>>, vector<128x128xf32>
    %cst_8 = arith.constant dense<0.000000e+00> : vector<128x128xf32>
    %9 = tpu.matmul %8, %7, %cst_8 {dimension_numbers = #tpu.dot_dimension_numbers<[1], [0], [0], [1], [0, 0, 1, 1], [], []>} : vector<128x128xf32>, vector<128x128xf32>, vector<128x128xf32> -> vector<128x128xf32>
    %c0_9 = arith.constant 0 : index
    %c0_10 = arith.constant 0 : index
    %10 = vector.load %arg5[%c0_9, %c0_10] : memref<128x1xf32, #tpu.memory_space<vmem>>, vector<128x1xf32>
    %11 = vector.broadcast %10 : vector<128x1xf32> to vector<128x128xf32>
    %12 = arith.addf %9, %11 : vector<128x128xf32>
    %cst_11 = arith.constant 0.000000e+00 : f32
    %13 = vector.broadcast %cst_11 : f32 to vector<128x128xf32>
    %14 = arith.maximumf %12, %13 : vector<128x128xf32>
    %c0_12 = arith.constant 0 : index
    %c0_13 = arith.constant 0 : index
    %15 = vector.load %arg6[%c0_12, %c0_13] : memref<128x128xf32, #tpu.memory_space<vmem>>, vector<128x128xf32>
    %cst_14 = arith.constant dense<0.000000e+00> : vector<128x128xf32>
    %16 = tpu.matmul %15, %14, %cst_14 {dimension_numbers = #tpu.dot_dimension_numbers<[1], [0], [0], [1], [0, 0, 1, 1], [], []>} : vector<128x128xf32>, vector<128x128xf32>, vector<128x128xf32> -> vector<128x128xf32>
    %c0_15 = arith.constant 0 : index
    %c0_16 = arith.constant 0 : index
    %17 = vector.load %arg7[%c0_15, %c0_16] : memref<128x1xf32, #tpu.memory_space<vmem>>, vector<128x1xf32>
    %18 = vector.broadcast %17 : vector<128x1xf32> to vector<128x128xf32>
    %19 = arith.addf %16, %18 : vector<128x128xf32>
    %cst_17 = arith.constant 0.000000e+00 : f32
    %20 = vector.broadcast %cst_17 : f32 to vector<128x128xf32>
    %21 = arith.maximumf %19, %20 : vector<128x128xf32>
    %c0_18 = arith.constant 0 : index
    %c0_19 = arith.constant 0 : index
    %22 = vector.load %arg8[%c0_18, %c0_19] : memref<128x128xf32, #tpu.memory_space<vmem>>, vector<128x128xf32>
    %cst_20 = arith.constant dense<0.000000e+00> : vector<128x128xf32>
    %23 = tpu.matmul %22, %21, %cst_20 {dimension_numbers = #tpu.dot_dimension_numbers<[1], [0], [0], [1], [0, 0, 1, 1], [], []>} : vector<128x128xf32>, vector<128x128xf32>, vector<128x128xf32> -> vector<128x128xf32>
    %c0_21 = arith.constant 0 : index
    %c0_22 = arith.constant 0 : index
    %24 = vector.load %arg9[%c0_21, %c0_22] : memref<128x1xf32, #tpu.memory_space<vmem>>, vector<128x1xf32>
    %25 = vector.broadcast %24 : vector<128x1xf32> to vector<128x128xf32>
    %26 = arith.addf %23, %25 : vector<128x128xf32>
    %cst_23 = arith.constant 0.000000e+00 : f32
    %27 = vector.broadcast %cst_23 : f32 to vector<128x128xf32>
    %28 = arith.maximumf %26, %27 : vector<128x128xf32>
    %c0_24 = arith.constant 0 : index
    %c0_25 = arith.constant 0 : index
    %29 = vector.load %arg10[%c0_24, %c0_25] : memref<128x1xf32, #tpu.memory_space<vmem>>, vector<128x1xf32>
    %30 = vector.broadcast %29 : vector<128x1xf32> to vector<128x128xf32>
    %31 = arith.mulf %28, %30 : vector<128x128xf32>
    %cst_26 = arith.constant dense<0.000000e+00> : vector<128xf32>
    %32 = vector.multi_reduction <add>, %31, %cst_26 [0] : vector<128x128xf32> to vector<128xf32>
    %33 = vector.shape_cast %32 : vector<128xf32> to vector<1x128xf32>
    %c0_27 = arith.constant 0 : index
    %c0_28 = arith.constant 0 : index
    %34 = vector.load %arg11[%c0_27, %c0_28] : memref<1x1xf32, #tpu.memory_space<vmem>>, vector<1x1xf32>
    %35 = vector.broadcast %34 : vector<1x1xf32> to vector<1x128xf32>
    %36 = arith.addf %33, %35 : vector<1x128xf32>
    %c0_29 = arith.constant 0 : index
    %c0_30 = arith.constant 0 : index
    %37 = vector.load %arg12[%c0_29, %c0_30] : memref<1x128xf32, #tpu.memory_space<vmem>>, vector<1x128xf32>
    tpu.vector_store %arg12[%c0_29, %c0_30], %36 {strides = array<i32>} : memref<1x128xf32, #tpu.memory_space<vmem>>, vector<1x128xf32>,
    return
  }
  func.func @transform_0(%arg0: i32) -> (i32, i32) {
    %c0_i32 = arith.constant 0 : i32
    %c0_i32_0 = arith.constant 0 : i32
    return %c0_i32, %arg0 : i32, i32
  }
  func.func @transform_1(%arg0: i32) -> (i32, i32) {
    %c0_i32 = arith.constant 0 : i32
    %c0_i32_0 = arith.constant 0 : i32
    %c0_i32_1 = arith.constant 0 : i32
    return %c0_i32, %c0_i32_0 : i32, i32
  }
  func.func @transform_2(%arg0: i32) -> (i32, i32) {
    %c0_i32 = arith.constant 0 : i32
    %c0_i32_0 = arith.constant 0 : i32
    %c0_i32_1 = arith.constant 0 : i32
    return %c0_i32, %c0_i32_0 : i32, i32
  }
  func.func @transform_3(%arg0: i32) -> (i32, i32) {
    %c0_i32 = arith.constant 0 : i32
    %c0_i32_0 = arith.constant 0 : i32
    %c0_i32_1 = arith.constant 0 : i32
    return %c0_i32, %c0_i32_0 : i32, i32
  }
  func.func @transform_4(%arg0: i32) -> (i32, i32) {
    %c0_i32 = arith.constant 0 : i32
    %c0_i32_0 = arith.constant 0 : i32
    %c0_i32_1 = arith.constant 0 : i32
    return %c0_i32, %c0_i32_0 : i32, i32
  }
  func.func @transform_5(%arg0: i32) -> (i32, i32) {
    %c0_i32 = arith.constant 0 : i32
    %c0_i32_0 = arith.constant 0 : i32
    %c0_i32_1 = arith.constant 0 : i32
    return %c0_i32, %c0_i32_0 : i32, i32
  }
  func.func @transform_6(%arg0: i32) -> (i32, i32) {
    %c0_i32 = arith.constant 0 : i32
    %c0_i32_0 = arith.constant 0 : i32
    %c0_i32_1 = arith.constant 0 : i32
    return %c0_i32, %c0_i32_0 : i32, i32
  }
  func.func @transform_7(%arg0: i32) -> (i32, i32) {
    %c0_i32 = arith.constant 0 : i32
    %c0_i32_0 = arith.constant 0 : i32
    %c0_i32_1 = arith.constant 0 : i32
    return %c0_i32, %c0_i32_0 : i32, i32
  }
  func.func @transform_8(%arg0: i32) -> (i32, i32) {
    %c0_i32 = arith.constant 0 : i32
    %c0_i32_0 = arith.constant 0 : i32
    %c0_i32_1 = arith.constant 0 : i32
    return %c0_i32, %c0_i32_0 : i32, i32
  }
  func.func @transform_9(%arg0: i32) -> (i32, i32) {
    %c0_i32 = arith.constant 0 : i32
    %c0_i32_0 = arith.constant 0 : i32
    %c0_i32_1 = arith.constant 0 : i32
    return %c0_i32, %c0_i32_0 : i32, i32
  }
  func.func @transform_10(%arg0: i32) -> (i32, i32) {
    %c0_i32 = arith.constant 0 : i32
    %c0_i32_0 = arith.constant 0 : i32
    %c0_i32_1 = arith.constant 0 : i32
    return %c0_i32, %c0_i32_0 : i32, i32
  }
  func.func @transform_11(%arg0: i32) -> (i32, i32) {
    %c0_i32 = arith.constant 0 : i32
    %c0_i32_0 = arith.constant 0 : i32
    return %c0_i32, %arg0 : i32, i32
  }
}

</mosaic_0001>

<bundles_post_ra>
// kernel: tpu_custom_call.1
= control target key start
LH: loop header
LB: loop body
LE: loop exit
PB: predicated region body
PF: predicated region fallthrough
CT: control target
= control target key end

     0   :  { %s2289_s0 = inlined_call_operand.vmem [shape: f32[3,128], index: 0, kind: input, shape index: {}]   ;;  %s2290_s1 = inlined_call_operand.vmem [shape: f32[128,3], index: 1, kind: input, shape index: {}]   ;;  %s2291_s2 = inlined_call_operand.vmem [shape: f32[128,1], index: 2, kind: input, shape index: {}]   ;;  %s2292_s3 = inlined_call_operand.vmem [shape: f32[128,128], index: 3, kind: input, shape index: {}]   ;;  %s2293_s4 = inlined_call_operand.vmem [shape: f32[128,1], index: 4, kind: input, shape index: {}]   ;;  %s2294_s5 = inlined_call_operand.vmem [shape: f32[128,128], index: 5, kind: input, shape index: {}]   ;;  %s2295_s6 = inlined_call_operand.vmem [shape: f32[128,1], index: 6, kind: input, shape index: {}]   ;;  %s2296_s7 = inlined_call_operand.vmem [shape: f32[128,128], index: 7, kind: input, shape index: {}]   ;;  %s2297_s8 = inlined_call_operand.vmem [shape: f32[128,1], index: 8, kind: input, shape index: {}]   ;;  %s2298_s9 = inlined_call_operand.vmem [shape: f32[128,1], index: 9, kind: input, shape index: {}]   ;;  %s2299_s10 = inlined_call_operand.<no memory space> [shape: f32[1,1], index: 10, kind: input, shape index: {}]   ;;  %s2300_s11 = inlined_call_operand.hbm [shape: f32[1,128], index: 11, kind: output, shape index: {}]  }
   0x1   :  { %v16_v0 = vstv %s2299_s10 }
   0x2   :  { %17 = vst [vmem:[#allocation2] sm:$0x1] %v16_v0 }
   0x3   :  { %v41_v1 = vld [vmem:[%s2289_s0] sm:$0x7]  ;;  %vm203_vm0 = vcmask 1042432   ;;  %v73_v2 = vld [vmem:[%s2291_s2 + $0x78] sm:$0xff]  ;;  %v71_v3 = vld [vmem:[%s2291_s2 + $0x68] sm:$0xff]  ;;  %v1728_v4 = vmov 0  }
   0x4   :  { %1705 = vset.pattern.permute.xlu1 %v1728_v4  ;;  %1704 = vset.pattern.permute.xlu0 %v1728_v4  ;;  %v42_v5 = vld [vmem:[%s2290_s1] sm:$0xff]  ;;  %vm154_vm1 = vcmask 23552   ;;  %v43_v6 = vld [vmem:[%s2290_s1 + $0x8] sm:$0xff]  ;;  %v72_v7 = vld [vmem:[%s2291_s2 + $0x70] sm:$0xff] }
   0x5   :  { %1476 = vmatprep.subr.msk.mxu0 %vm203_vm0, %v41_v1  ;;  %151 = vperm.xlu0 %1704, %v73_v2   ;;  %v44_v8 = vld [vmem:[%s2290_s1 + $0x10] sm:$0xff]  ;;  %v70_v9 = vld [vmem:[%s2291_s2 + $0x60] sm:$0xff]  ;;  %v45_v10 = vld [vmem:[%s2290_s1 + $0x18] sm:$0xff] }
   0x6   :  { %141 = vperm.xlu1 %1705, %v71_v3   ;;  %1477 = vmatpush3.msk.msra.mxu0 %vm203_vm0, %v41_v1  ;;  %v69_v11 = vld [vmem:[%s2291_s2 + $0x58] sm:$0xff]  ;;  %v46_v12 = vld [vmem:[%s2290_s1 + $0x20] sm:$0xff]  ;;  %v68_v13 = vld [vmem:[%s2291_s2 + $0x50] sm:$0xff] }
   0x7   :  { %1478 = vmatprep.mubr.msk.f32.mxu0 %vm154_vm1, %v42_v5  ;;  %v47_v14 = vld [vmem:[%s2290_s1 + $0x28] sm:$0xff]  ;;  %v48_v16 = vld [vmem:[%s2290_s1 + $0x30] sm:$0xff]  ;;  %v66_v17 = vld [vmem:[%s2291_s2 + $0x40] sm:$0xff] }
   0x8   :  { %1479 = vmatmul.mubr.msk.f32.vlgmr.msra.gmra.mxu0 %vm154_vm1, %v43_v6  ;;  %v67_v15 = vld [vmem:[%s2291_s2 + $0x48] sm:$0xff]  ;;  %v49_v18 = vld [vmem:[%s2290_s1 + $0x38] sm:$0xff]  ;;  %v50_v20 = vld [vmem:[%s2290_s1 + $0x40] sm:$0xff] }
   0x9   :  { %146 = vperm.xlu0 %1704, %v72_v7   ;;  %1481 = vmatprep.mubr.msk.f32.mxu0 %vm154_vm1, %v44_v8  ;;  %v65_v19 = vld [vmem:[%s2291_s2 + $0x38] sm:$0xff]  ;;  %v64_v21 = vld [vmem:[%s2291_s2 + $0x30] sm:$0xff]  ;;  %v51_v22 = vld [vmem:[%s2290_s1 + $0x48] sm:$0xff] }
   0xa   :  { %136 = vperm.xlu1 %1705, %v70_v9   ;;  %v63_v23 = vld [vmem:[%s2291_s2 + $0x28] sm:$0xff]  ;;  %v52_v24 = vld [vmem:[%s2290_s1 + $0x50] sm:$0xff]  ;;  %v62_v25 = vld [vmem:[%s2291_s2 + $0x20] sm:$0xff] }
   0xb   :  { %v53_v26 = vld [vmem:[%s2290_s1 + $0x58] sm:$0xff]  ;;  %v54_v28 = vld [vmem:[%s2290_s1 + $0x60] sm:$0xff]  ;;  %v60_v29 = vld [vmem:[%s2291_s2 + $0x10] sm:$0xff] }
   0xc   :  { %1482 = vmatmul.mubr.msk.f32.gmra.mxu0 %vm154_vm1, %v45_v10  ;;  %v61_v27 = vld [vmem:[%s2291_s2 + $0x18] sm:$0xff]  ;;  %v55_v30 = vld [vmem:[%s2290_s1 + $0x68] sm:$0xff]  ;;  %v56_v32 = vld [vmem:[%s2290_s1 + $0x70] sm:$0xff] }
   0xd   :  { %131 = vperm.xlu0 %1704, %v69_v11   ;;  %1484 = vmatprep.mubr.msk.f32.mxu0 %vm154_vm1, %v46_v12  ;;  %v59_v31 = vld [vmem:[%s2291_s2 + $0x8] sm:$0xff]  ;;  %v58_v33 = vld [vmem:[%s2291_s2] sm:$0xff]  ;;  %v57_v34 = vld [vmem:[%s2290_s1 + $0x78] sm:$0xff] }
   0xe   :  { %126 = vperm.xlu1 %1705, %v68_v13   ;;  %v399_v35 = vld [vmem:[%s2293_s4 + $0x78] sm:$0xff]  ;;  %v398_v36 = vld [vmem:[%s2293_s4 + $0x70] sm:$0xff] }
  0x10   :  { %1485 = vmatmul.mubr.msk.f32.gmra.mxu0 %vm154_vm1, %v47_v14 }
  0x11   :  { %121 = vperm.xlu0 %1704, %v67_v15   ;;  %1487 = vmatprep.mubr.msk.f32.mxu0 %vm154_vm1, %v48_v16 }
  0x12   :  { %116 = vperm.xlu1 %1705, %v66_v17  }
  0x14   :  { %1488 = vmatmul.mubr.msk.f32.gmra.mxu0 %vm154_vm1, %v49_v18 }
  0x15   :  { %111 = vperm.xlu0 %1704, %v65_v19   ;;  %1490 = vmatprep.mubr.msk.f32.mxu0 %vm154_vm1, %v50_v20 }
  0x16   :  { %106 = vperm.xlu1 %1705, %v64_v21  }
  0x18   :  { %1491 = vmatmul.mubr.msk.f32.gmra.mxu0 %vm154_vm1, %v51_v22 }
  0x19   :  { %101 = vperm.xlu0 %1704, %v63_v23   ;;  %1493 = vmatprep.mubr.msk.f32.mxu0 %vm154_vm1, %v52_v24 }
  0x1a   :  { %96 = vperm.xlu1 %1705, %v62_v25  }
  0x1c   :  { %1494 = vmatmul.mubr.msk.f32.gmra.mxu0 %vm154_vm1, %v53_v26 }
  0x1d   :  { %91 = vperm.xlu0 %1704, %v61_v27   ;;  %1496 = vmatprep.mubr.msk.f32.mxu0 %vm154_vm1, %v54_v28 }
  0x1e   :  { %86 = vperm.xlu1 %1705, %v60_v29  }
  0x20   :  { %1497 = vmatmul.mubr.msk.f32.gmra.mxu0 %vm154_vm1, %v55_v30 }
  0x21   :  { %81 = vperm.xlu0 %1704, %v59_v31   ;;  %1499 = vmatprep.mubr.msk.f32.mxu0 %vm154_vm1, %v56_v32 }
  0x22   :  { %76 = vperm.xlu1 %1705, %v58_v33  }
  0x23   :  { %18 = vsyncpa [#allocation4], 0  ;;  %v397_v37 = vld [vmem:[%s2293_s4 + $0x68] sm:$0xff]  ;;  %v396_v38 = vld [vmem:[%s2293_s4 + $0x60] sm:$0xff] }
  0x24   :  { %1500 = vmatmul.mubr.msk.f32.gmra.mxu0 %vm154_vm1, %v57_v34  ;;  %v395_v39 = vld [vmem:[%s2293_s4 + $0x58] sm:$0xff]  ;;  %v394_v40 = vld [vmem:[%s2293_s4 + $0x50] sm:$0xff]  ;;  %v393_v41 = vld [vmem:[%s2293_s4 + $0x48] sm:$0xff] }
  0x25   :  { %477 = vperm.xlu0 %1704, %v399_v35   ;;  %v392_v42 = vld [vmem:[%s2293_s4 + $0x40] sm:$0xff]  ;;  %v391_v43 = vld [vmem:[%s2293_s4 + $0x38] sm:$0xff]  ;;  %v390_v44 = vld [vmem:[%s2293_s4 + $0x30] sm:$0xff] }
  0x26   :  { %472 = vperm.xlu1 %1705, %v398_v36   ;;  %v389_v45 = vld [vmem:[%s2293_s4 + $0x28] sm:$0xff]  ;;  %v388_v46 = vld [vmem:[%s2293_s4 + $0x20] sm:$0xff]  ;;  %v387_v47 = vld [vmem:[%s2293_s4 + $0x18] sm:$0xff] }
  0x27   :  { %v386_v48 = vld [vmem:[%s2293_s4 + $0x10] sm:$0xff]  ;;  %v385_v49 = vld [vmem:[%s2293_s4 + $0x8] sm:$0xff]  ;;  %v384_v50 = vld [vmem:[%s2293_s4] sm:$0xff] }
  0x28   :  { %v672_v51 = vld [vmem:[%s2295_s6 + $0x78] sm:$0xff]  ;;  %v671_v52 = vld [vmem:[%s2295_s6 + $0x70] sm:$0xff]  ;;  %v670_v53 = vld [vmem:[%s2295_s6 + $0x68] sm:$0xff] }
  0x29   :  { %467 = vperm.xlu0 %1704, %v397_v37   ;;  %v669_v54 = vld [vmem:[%s2295_s6 + $0x60] sm:$0xff]  ;;  %v668_v55 = vld [vmem:[%s2295_s6 + $0x58] sm:$0xff]  ;;  %v667_v56 = vld [vmem:[%s2295_s6 + $0x50] sm:$0xff] }
  0x2a   :  { %462 = vperm.xlu1 %1705, %v396_v38   ;;  %v666_v57 = vld [vmem:[%s2295_s6 + $0x48] sm:$0xff]  ;;  %v665_v58 = vld [vmem:[%s2295_s6 + $0x40] sm:$0xff]  ;;  %v664_v59 = vld [vmem:[%s2295_s6 + $0x38] sm:$0xff] }
  0x2b   :  { %v663_v60 = vld [vmem:[%s2295_s6 + $0x30] sm:$0xff]  ;;  %v662_v61 = vld [vmem:[%s2295_s6 + $0x28] sm:$0xff]  ;;  %v661_v62 = vld [vmem:[%s2295_s6 + $0x20] sm:$0xff] }
  0x2c   :  { %v660_v63 = vld [vmem:[%s2295_s6 + $0x18] sm:$0xff]  ;;  %v659_v0 = vld [vmem:[%s2295_s6 + $0x10] sm:$0xff]  ;;  %v658_v1 = vld [vmem:[%s2295_s6 + $0x8] sm:$0xff] }
  0x2d   :  { %457 = vperm.xlu0 %1704, %v395_v39   ;;  %v657_v2 = vld [vmem:[%s2295_s6] sm:$0xff]  ;;  %v931_v4 = vld [vmem:[%s2297_s8 + $0x8] sm:$0xff]  ;;  %v932_v5 = vld [vmem:[%s2297_s8 + $0x10] sm:$0xff] }
  0x2e   :  { %452 = vperm.xlu1 %1705, %v394_v40   ;;  %v930_v3 = vld [vmem:[%s2297_s8] sm:$0xff]  ;;  %v933_v6 = vld [vmem:[%s2297_s8 + $0x18] sm:$0xff]  ;;  %v935_v8 = vld [vmem:[%s2297_s8 + $0x28] sm:$0xff] }
  0x2f   :  { %v934_v7 = vld [vmem:[%s2297_s8 + $0x20] sm:$0xff]  ;;  %v1188_v10 = vld [vmem:[%s2298_s9 + $0x8] sm:$0xff]  ;;  %v1189_v11 = vld [vmem:[%s2298_s9 + $0x10] sm:$0xff] }
  0x30   :  { %v1187_v9 = vld [vmem:[%s2298_s9] sm:$0xff]  ;;  %v1190_v12 = vld [vmem:[%s2298_s9 + $0x18] sm:$0xff]  ;;  %v936_v13 = vld [vmem:[%s2297_s8 + $0x30] sm:$0xff] }
  0x31   :  { %447 = vperm.xlu0 %1704, %v393_v41   ;;  %v1191_v14 = vld [vmem:[%s2298_s9 + $0x20] sm:$0xff]  ;;  %v937_v15 = vld [vmem:[%s2297_s8 + $0x38] sm:$0xff]  ;;  %v1192_v16 = vld [vmem:[%s2298_s9 + $0x28] sm:$0xff] }
  0x32   :  { %442 = vperm.xlu1 %1705, %v392_v42   ;;  %v938_v17 = vld [vmem:[%s2297_s8 + $0x40] sm:$0xff]  ;;  %v1193_v18 = vld [vmem:[%s2298_s9 + $0x30] sm:$0xff]  ;;  %v939_v19 = vld [vmem:[%s2297_s8 + $0x48] sm:$0xff] }
  0x33   :  { %v1194_v20 = vld [vmem:[%s2298_s9 + $0x38] sm:$0xff]  ;;  %v940_v21 = vld [vmem:[%s2297_s8 + $0x50] sm:$0xff]  ;;  %v1195_v22 = vld [vmem:[%s2298_s9 + $0x40] sm:$0xff] }
  0x34   :  { %v368_v23 = vld [vmem:[%s2292_s3] sm:$0xff]  ;;  %v941_v24 = vld [vmem:[%s2297_s8 + $0x58] sm:$0xff]  ;;  %v1196_v25 = vld [vmem:[%s2298_s9 + $0x48] sm:$0xff] }
  0x35   :  { %437 = vperm.xlu0 %1704, %v391_v43   ;;  %1534 = vmatprep.mubr.f32.mxu1 %v368_v23  ;;  %v942_v26 = vld [vmem:[%s2297_s8 + $0x60] sm:$0xff]  ;;  %v1197_v27 = vld [vmem:[%s2298_s9 + $0x50] sm:$0xff]  ;;  %v943_v28 = vld [vmem:[%s2297_s8 + $0x68] sm:$0xff] }
  0x36   :  { %432 = vperm.xlu1 %1705, %v390_v44   ;;  %v1198_v29 = vld [vmem:[%s2298_s9 + $0x58] sm:$0xff]  ;;  %v944_v30 = vld [vmem:[%s2297_s8 + $0x70] sm:$0xff]  ;;  %v1199_v31 = vld [vmem:[%s2298_s9 + $0x60] sm:$0xff] }
  0x37   :  { %v945_v32 = vld [vmem:[%s2297_s8 + $0x78] sm:$0xff]  ;;  %v1200_v33 = vld [vmem:[%s2298_s9 + $0x68] sm:$0xff]  ;;  %v1201_v34 = vld [vmem:[%s2298_s9 + $0x70] sm:$0xff] }
  0x38   :  { %v1202_v35 = vld [vmem:[%s2298_s9 + $0x78] sm:$0xff]  ;;  %v1320_v36 = vld [vmem:[#allocation2] sm:$0x1] }
  0x39   :  { %427 = vperm.xlu0 %1704, %v389_v45  }
  0x3a   :  { %422 = vperm.xlu1 %1705, %v388_v46  }
  0x3d   :  { %417 = vperm.xlu0 %1704, %v387_v47  }
  0x3e   :  { %412 = vperm.xlu1 %1705, %v386_v48  }
  0x41   :  { %407 = vperm.xlu0 %1704, %v385_v49  }
  0x42   :  { %402 = vperm.xlu1 %1705, %v384_v50  }
  0x45   :  { %750 = vperm.xlu0 %1704, %v672_v51  }
  0x46   :  { %745 = vperm.xlu1 %1705, %v671_v52  }
  0x49   :  { %740 = vperm.xlu0 %1704, %v670_v53  }
  0x4a   :  { %735 = vperm.xlu1 %1705, %v669_v54  }
  0x4d   :  { %730 = vperm.xlu0 %1704, %v668_v55  }
  0x4e   :  { %725 = vperm.xlu1 %1705, %v667_v56  }
  0x51   :  { %720 = vperm.xlu0 %1704, %v666_v57  }
  0x52   :  { %715 = vperm.xlu1 %1705, %v665_v58  }
  0x55   :  { %710 = vperm.xlu0 %1704, %v664_v59  }
  0x56   :  { %705 = vperm.xlu1 %1705, %v663_v60  }
  0x59   :  { %700 = vperm.xlu0 %1704, %v662_v61  }
  0x5a   :  { %695 = vperm.xlu1 %1705, %v661_v62  }
  0x5d   :  { %690 = vperm.xlu0 %1704, %v660_v63  }
  0x5e   :  { %685 = vperm.xlu1 %1705, %v659_v0  }
  0x61   :  { %680 = vperm.xlu0 %1704, %v658_v1  }
  0x62   :  { %675 = vperm.xlu1 %1705, %v657_v2  }
  0x65   :  { %948 = vperm.xlu0 %1704, %v930_v3  }
  0x66   :  { %953 = vperm.xlu1 %1705, %v931_v4  }
  0x69   :  { %958 = vperm.xlu0 %1704, %v932_v5  }
  0x6a   :  { %963 = vperm.xlu1 %1705, %v933_v6  }
  0x6d   :  { %968 = vperm.xlu0 %1704, %v934_v7  }
  0x6e   :  { %973 = vperm.xlu1 %1705, %v935_v8  }
  0x71   :  { %1205 = vperm.xlu0 %1704, %v1187_v9  }
  0x72   :  { %1210 = vperm.xlu1 %1705, %v1188_v10  }
  0x75   :  { %1215 = vperm.xlu0 %1704, %v1189_v11  }
  0x76   :  { %1220 = vperm.xlu1 %1705, %v1190_v12  }
  0x79   :  { %978 = vperm.xlu0 %1704, %v936_v13  }
  0x7a   :  { %1225 = vperm.xlu1 %1705, %v1191_v14  }
  0x7d   :  { %983 = vperm.xlu0 %1704, %v937_v15  }
  0x7e   :  { %1230 = vperm.xlu1 %1705, %v1192_v16  }
  0x80   :  { %v152_v43 = vpop.permute.xlu0 %151 }
  0x81   :  { %988 = vperm.xlu0 %1704, %v938_v17   ;;  %v142_v45 = vpop.permute.xlu1 %141 }
  0x82   :  { %1235 = vperm.xlu1 %1705, %v1193_v18  }
  0x84   :  { %v147_v48 = vpop.permute.xlu0 %146 }
  0x85   :  { %993 = vperm.xlu0 %1704, %v939_v19   ;;  %v137_v50 = vpop.permute.xlu1 %136 }
  0x86   :  { %1240 = vperm.xlu1 %1705, %v1194_v20  }
  0x88   :  { %v132_v53 = vpop.permute.xlu0 %131 }
  0x89   :  { %998 = vperm.xlu0 %1704, %v940_v21   ;;  %v127_v55 = vpop.permute.xlu1 %126 }
  0x8a   :  { %1245 = vperm.xlu1 %1705, %v1195_v22  }
  0x8c   :  { %v122_v59 = vpop.permute.xlu0 %121 }
  0x8d   :  { %1003 = vperm.xlu0 %1704, %v941_v24   ;;  %v117_v0 = vpop.permute.xlu1 %116 }
  0x8e   :  { %1250 = vperm.xlu1 %1705, %v1196_v25  }
  0x90   :  { %v112_v5 = vpop.permute.xlu0 %111 }
  0x91   :  { %1008 = vperm.xlu0 %1704, %v942_v26   ;;  %v107_v8 = vpop.permute.xlu1 %106 }
  0x92   :  { %1255 = vperm.xlu1 %1705, %v1197_v27  }
  0x94   :  { %v102_v13 = vpop.permute.xlu0 %101 }
  0x95   :  { %1013 = vperm.xlu0 %1704, %v943_v28   ;;  %v97_v16 = vpop.permute.xlu1 %96 }
  0x96   :  { %1260 = vperm.xlu1 %1705, %v1198_v29  }
  0x98   :  { %v92_v21 = vpop.permute.xlu0 %91 }
  0x99   :  { %1018 = vperm.xlu0 %1704, %v944_v30   ;;  %v87_v24 = vpop.permute.xlu1 %86 }
  0x9a   :  { %1265 = vperm.xlu1 %1705, %v1199_v31  }
  0x9c   :  { %v82_v29 = vpop.permute.xlu0 %81 }
  0x9d   :  { %1023 = vperm.xlu0 %1704, %v945_v32   ;;  %v77_v32 = vpop.permute.xlu1 %76 }
  0x9e   :  { %1270 = vperm.xlu1 %1705, %v1200_v33  }
  0xa1   :  { %1275 = vperm.xlu0 %1704, %v1201_v34  }
  0xa2   :  { %1280 = vperm.xlu1 %1705, %v1202_v35  }
  0xa5   :  { %1323 = vperm.xlu0 %1704, %v1320_v36  }
  0xc8   :  { %v2103_v37 = vpop.f32.mrf.mxu0 }
  0xc9   :  { %v279_v30 = vadd.f32 %v2103_v37, %v82_v29  ;;  %v370_v37 = vld [vmem:[%s2292_s3 + $0x10] sm:$0xff] }
  0xca   :  { %v2105_v38 = vpop.f32.mrf.mxu0 }
  0xcb   :  { %v274_v33 = vadd.f32 %v2105_v38, %v77_v32  ;;  %v353_v35 = vmax.f32 %v279_v30, 0.0  ;;  %v371_v38 = vld [vmem:[%s2292_s3 + $0x18] sm:$0xff] }
  0xcc   :  { %v2107_v39 = vpop.f32.mrf.mxu0 }
  0xcd   :  { %v289_v25 = vadd.f32 %v2107_v39, %v92_v21  ;;  %v352_v36 = vmax.f32 %v274_v33, 0.0  ;;  %v369_v39 = vld [vmem:[%s2292_s3 + $0x8] sm:$0xff] }
  0xce   :  { %v2109_v40 = vpop.f32.mrf.mxu0 }
  0xcf   :  { %v284_v27 = vadd.f32 %v2109_v40, %v87_v24  ;;  %v355_v31 = vmax.f32 %v289_v25, 0.0  ;;  %v372_v40 = vld [vmem:[%s2292_s3 + $0x20] sm:$0xff] }
  0xd0   :  { %v1486_v41 = vpop.f32.mrf.mxu0 }
  0xd1   :  { %v299_v19 = vadd.f32 %v1486_v41, %v102_v13  ;;  %v354_v34 = vmax.f32 %v284_v27, 0.0  ;;  %v373_v41 = vld [vmem:[%s2292_s3 + $0x28] sm:$0xff] }
  0xd2   :  { %v293_v42 = vpop.f32.mrf.mxu0 }
  0xd3   :  { %v294_v22 = vadd.f32 %v293_v42, %v97_v16  ;;  %v357_v26 = vmax.f32 %v299_v19, 0.0  ;;  %v374_v42 = vld [vmem:[%s2292_s3 + $0x30] sm:$0xff] }
  0xd4   :  { %v1489_v44 = vpop.f32.mrf.mxu0 }
  0xd5   :  { %v309_v14 = vadd.f32 %v1489_v44, %v112_v5  ;;  %v356_v28 = vmax.f32 %v294_v22, 0.0  ;;  %v376_v44 = vld [vmem:[%s2292_s3 + $0x40] sm:$0xff] }
  0xd6   :  { %v303_v46 = vpop.f32.mrf.mxu0 }
  0xd7   :  { %v304_v17 = vadd.f32 %v303_v46, %v107_v8  ;;  %v359_v20 = vmax.f32 %v309_v14, 0.0  ;;  %v378_v46 = vld [vmem:[%s2292_s3 + $0x50] sm:$0xff] }
  0xd8   :  { %v1492_v47 = vpop.f32.mrf.mxu0 }
  0xd9   :  { %v319_v9 = vadd.f32 %v1492_v47, %v122_v59  ;;  %v358_v23 = vmax.f32 %v304_v17, 0.0  ;;  %v379_v47 = vld [vmem:[%s2292_s3 + $0x58] sm:$0xff]  ;;  %v478_v59 = vpop.permute.xlu0 %477 }
  0xda   :  { %v313_v49 = vpop.f32.mrf.mxu0 }
  0xdb   :  { %v314_v11 = vadd.f32 %v313_v49, %v117_v0  ;;  %v361_v15 = vmax.f32 %v319_v9, 0.0  ;;  %v381_v49 = vld [vmem:[%s2292_s3 + $0x68] sm:$0xff] }
  0xdc   :  { %v1495_v51 = vpop.f32.mrf.mxu0 }
  0xdd   :  { %v329_v3 = vadd.f32 %v1495_v51, %v132_v53  ;;  %v360_v18 = vmax.f32 %v314_v11, 0.0  ;;  %v383_v51 = vld [vmem:[%s2292_s3 + $0x78] sm:$0xff]  ;;  %v468_v0 = vpop.permute.xlu0 %467 }
  0xde   :  { %v323_v52 = vpop.f32.mrf.mxu0 }
  0xdf   :  { %v324_v6 = vadd.f32 %v323_v52, %v127_v55  ;;  %v363_v10 = vmax.f32 %v329_v3, 0.0  ;;  %v641_v52 = vld [vmem:[%s2294_s5] sm:$0xff] }
  0xe0   :  { %v1498_v54 = vpop.f32.mrf.mxu0  ;;  %1590 = vmatprep.mubr.f32.mxu0 %v641_v52 }
  0xe1   :  { %v339_v61 = vadd.f32 %v1498_v54, %v142_v45  ;;  %v362_v12 = vmax.f32 %v324_v6, 0.0  ;;  %v377_v45 = vld [vmem:[%s2292_s3 + $0x48] sm:$0xff]  ;;  %v458_v5 = vpop.permute.xlu0 %457 }
  0xe2   :  { %v333_v56 = vpop.f32.mrf.mxu0 }
  0xe3   :  { %v334_v1 = vadd.f32 %v333_v56, %v137_v50  ;;  %v365_v4 = vmax.f32 %v339_v61, 0.0  ;;  %v382_v50 = vld [vmem:[%s2292_s3 + $0x70] sm:$0xff]  ;;  %v473_v61 = vpop.permute.xlu1 %472 }
  0xe4   :  { %v1501_v57 = vpop.f32.mrf.mxu0 }
  0xe5   :  { %v349_v58 = vadd.f32 %v1501_v57, %v152_v43  ;;  %v364_v7 = vmax.f32 %v334_v1, 0.0  ;;  %v375_v43 = vld [vmem:[%s2292_s3 + $0x38] sm:$0xff]  ;;  %v448_v11 = vpop.permute.xlu0 %447 }
  0xe6   :  { %v343_v60 = vpop.f32.mrf.mxu0 }
  0xe7   :  { %v367_v62 = vmax.f32 %v349_v58, 0.0  ;;  %v344_v63 = vadd.f32 %v343_v60, %v147_v48  ;;  %v380_v48 = vld [vmem:[%s2292_s3 + $0x60] sm:$0xff] }
  0xe9   :  { %v366_v2 = vmax.f32 %v344_v63, 0.0  ;;  %1502 = vmatprep.subr.mxu1 %v367_v62  ;;  %v438_v21 = vpop.permute.xlu0 %437 }
  0xea   :  { %1503 = vmatpush3.msra.mxu1 %v367_v62 }
  0xeb   :  { %1504 = vmatprep.subr.mxu1 %v366_v2 }
  0xec   :  { %1505 = vmatpush3.msra.mxu1 %v366_v2  ;;  %v463_v2 = vpop.permute.xlu1 %462 }
  0xed   :  { %1506 = vmatprep.subr.mxu1 %v365_v4  ;;  %v428_v29 = vpop.permute.xlu0 %427 }
  0xee   :  { %1507 = vmatpush3.msra.mxu1 %v365_v4 }
  0xef   :  { %1508 = vmatprep.subr.mxu1 %v364_v7 }
  0xf0   :  { %1509 = vmatpush3.msra.mxu1 %v364_v7  ;;  %v453_v7 = vpop.permute.xlu1 %452 }
  0xf1   :  { %1510 = vmatprep.subr.mxu1 %v363_v10 }
  0xf2   :  { %1511 = vmatpush3.msra.mxu1 %v363_v10 }
  0xf3   :  { %1512 = vmatprep.subr.mxu1 %v362_v12 }
  0xf4   :  { %1513 = vmatpush3.msra.mxu1 %v362_v12  ;;  %v443_v16 = vpop.permute.xlu1 %442 }
  0xf5   :  { %1514 = vmatprep.subr.mxu1 %v361_v15 }
  0xf6   :  { %1515 = vmatpush3.msra.mxu1 %v361_v15 }
  0xf7   :  { %1516 = vmatprep.subr.mxu1 %v360_v18 }
  0xf8   :  { %1517 = vmatpush3.msra.mxu1 %v360_v18  ;;  %v433_v24 = vpop.permute.xlu1 %432 }
  0xf9   :  { %1518 = vmatprep.subr.mxu1 %v359_v20 }
  0xfa   :  { %1519 = vmatpush3.msra.mxu1 %v359_v20 }
  0xfb   :  { %1520 = vmatprep.subr.mxu1 %v358_v23 }
  0xfc   :  { %1521 = vmatpush3.msra.mxu1 %v358_v23  ;;  %v423_v32 = vpop.permute.xlu1 %422 }
  0xfd   :  { %1522 = vmatprep.subr.mxu1 %v357_v26 }
  0xfe   :  { %1523 = vmatpush3.msra.mxu1 %v357_v26 }
  0xff   :  { %1524 = vmatprep.subr.mxu1 %v356_v28 }
 0x100   :  { %1525 = vmatpush3.msra.mxu1 %v356_v28 }
 0x101   :  { %1526 = vmatprep.subr.mxu1 %v355_v31 }
 0x102   :  { %1527 = vmatpush3.msra.mxu1 %v355_v31 }
 0x103   :  { %1528 = vmatprep.subr.mxu1 %v354_v34 }
 0x104   :  { %1529 = vmatpush3.msra.mxu1 %v354_v34 }
 0x105   :  { %1530 = vmatprep.subr.mxu1 %v353_v35 }
 0x106   :  { %1531 = vmatpush3.msra.mxu1 %v353_v35 }
 0x107   :  { %1532 = vmatprep.subr.mxu1 %v352_v36 }
 0x108   :  { %1533 = vmatpush3.msra.mxu1 %v352_v36 }
 0x109   :  { %1535 = vmatmul.mubr.f32.vlgmr.msra.gmra.mxu1 %v369_v39  ;;  %v418_v39 = vpop.permute.xlu0 %417 }
 0x10a   :  { %1537 = vmatprep.mubr.f32.mxu1 %v370_v37 }
 0x10d   :  { %1538 = vmatmul.mubr.f32.gmra.mxu1 %v371_v38 }
 0x10e   :  { %1540 = vmatprep.mubr.f32.mxu1 %v372_v40  ;;  %v413_v40 = vpop.permute.xlu1 %412 }
 0x111   :  { %1541 = vmatmul.mubr.f32.gmra.mxu1 %v373_v41 }
 0x112   :  { %1543 = vmatprep.mubr.f32.mxu1 %v374_v42 }
 0x115   :  { %1544 = vmatmul.mubr.f32.gmra.mxu1 %v375_v43 }
 0x116   :  { %1546 = vmatprep.mubr.f32.mxu1 %v376_v44 }
 0x119   :  { %1547 = vmatmul.mubr.f32.gmra.mxu1 %v377_v45  ;;  %v408_v45 = vpop.permute.xlu0 %407 }
 0x11a   :  { %1549 = vmatprep.mubr.f32.mxu1 %v378_v46 }
 0x11d   :  { %1550 = vmatmul.mubr.f32.gmra.mxu1 %v379_v47 }
 0x11e   :  { %1552 = vmatprep.mubr.f32.mxu1 %v380_v48  ;;  %v403_v48 = vpop.permute.xlu1 %402 }
 0x121   :  { %1553 = vmatmul.mubr.f32.gmra.mxu1 %v381_v49 }
 0x122   :  { %1555 = vmatprep.mubr.f32.mxu1 %v382_v50 }
 0x125   :  { %1556 = vmatmul.mubr.f32.gmra.mxu1 %v383_v51 }
 0x1c9   :  { %v2163_v53 = vpop.f32.mrf.mxu1 }
 0x1ca   :  { %v552_v46 = vadd.f32 %v2163_v53, %v408_v45  ;;  %v643_v53 = vld [vmem:[%s2294_s5 + $0x10] sm:$0xff] }
 0x1cb   :  { %v2165_v54 = vpop.f32.mrf.mxu1 }
 0x1cc   :  { %v547_v49 = vadd.f32 %v2165_v54, %v403_v48  ;;  %v626_v51 = vmax.f32 %v552_v46, 0.0  ;;  %v644_v54 = vld [vmem:[%s2294_s5 + $0x18] sm:$0xff] }
 0x1cd   :  { %v2167_v55 = vpop.f32.mrf.mxu1 }
 0x1ce   :  { %v562_v41 = vadd.f32 %v2167_v55, %v418_v39  ;;  %v625_v52 = vmax.f32 %v547_v49, 0.0  ;;  %v642_v55 = vld [vmem:[%s2294_s5 + $0x8] sm:$0xff] }
 0x1cf   :  { %v2169_v56 = vpop.f32.mrf.mxu1 }
 0x1d0   :  { %v557_v43 = vadd.f32 %v2169_v56, %v413_v40  ;;  %v628_v47 = vmax.f32 %v562_v41, 0.0  ;;  %v645_v56 = vld [vmem:[%s2294_s5 + $0x20] sm:$0xff] }
 0x1d1   :  { %v1542_v57 = vpop.f32.mrf.mxu1 }
 0x1d2   :  { %v572_v35 = vadd.f32 %v1542_v57, %v428_v29  ;;  %v627_v50 = vmax.f32 %v557_v43, 0.0  ;;  %v646_v57 = vld [vmem:[%s2294_s5 + $0x28] sm:$0xff] }
 0x1d3   :  { %v566_v58 = vpop.f32.mrf.mxu1 }
 0x1d4   :  { %v567_v37 = vadd.f32 %v566_v58, %v423_v32  ;;  %v630_v42 = vmax.f32 %v572_v35, 0.0  ;;  %v647_v58 = vld [vmem:[%s2294_s5 + $0x30] sm:$0xff] }
 0x1d5   :  { %v1545_v60 = vpop.f32.mrf.mxu1 }
 0x1d6   :  { %v582_v30 = vadd.f32 %v1545_v60, %v438_v21  ;;  %v629_v44 = vmax.f32 %v567_v37, 0.0  ;;  %v649_v60 = vld [vmem:[%s2294_s5 + $0x40] sm:$0xff] }
 0x1d7   :  { %v576_v62 = vpop.f32.mrf.mxu1 }
 0x1d8   :  { %v577_v33 = vadd.f32 %v576_v62, %v433_v24  ;;  %v632_v36 = vmax.f32 %v582_v30, 0.0  ;;  %v651_v62 = vld [vmem:[%s2294_s5 + $0x50] sm:$0xff] }
 0x1d9   :  { %v1548_v63 = vpop.f32.mrf.mxu1 }
 0x1da   :  { %v592_v25 = vadd.f32 %v1548_v63, %v448_v11  ;;  %v631_v38 = vmax.f32 %v577_v33, 0.0  ;;  %v652_v63 = vld [vmem:[%s2294_s5 + $0x58] sm:$0xff] }
 0x1db   :  { %v586_v1 = vpop.f32.mrf.mxu1 }
 0x1dc   :  { %v587_v27 = vadd.f32 %v586_v1, %v443_v16  ;;  %v634_v31 = vmax.f32 %v592_v25, 0.0  ;;  %v654_v1 = vld [vmem:[%s2294_s5 + $0x68] sm:$0xff] }
 0x1dd   :  { %v1551_v3 = vpop.f32.mrf.mxu1 }
 0x1de   :  { %v602_v19 = vadd.f32 %v1551_v3, %v458_v5  ;;  %v633_v34 = vmax.f32 %v587_v27, 0.0  ;;  %v656_v3 = vld [vmem:[%s2294_s5 + $0x78] sm:$0xff]  ;;  %v920_v5 = vld [vmem:[%s2296_s7 + $0x30] sm:$0xff] }
 0x1df   :  { %v596_v4 = vpop.f32.mrf.mxu1  ;;  %1655 = vmatprep.mubr.f32.mxu1 %v920_v5 }
 0x1e0   :  { %v597_v22 = vadd.f32 %v596_v4, %v453_v7  ;;  %v636_v26 = vmax.f32 %v602_v19, 0.0  ;;  %v914_v4 = vld [vmem:[%s2296_s7] sm:$0xff] }
 0x1e1   :  { %v1554_v6 = vpop.f32.mrf.mxu1 }
 0x1e2   :  { %v612_v13 = vadd.f32 %v1554_v6, %v468_v0  ;;  %v635_v28 = vmax.f32 %v597_v22, 0.0  ;;  %v653_v0 = vld [vmem:[%s2294_s5 + $0x60] sm:$0xff] }
 0x1e3   :  { %v606_v8 = vpop.f32.mrf.mxu1 }
 0x1e4   :  { %v607_v17 = vadd.f32 %v606_v8, %v463_v2  ;;  %v638_v20 = vmax.f32 %v612_v13, 0.0  ;;  %v655_v2 = vld [vmem:[%s2294_s5 + $0x70] sm:$0xff] }
 0x1e5   :  { %v1557_v9 = vpop.f32.mrf.mxu1 }
 0x1e6   :  { %v622_v10 = vadd.f32 %v1557_v9, %v478_v59  ;;  %v637_v23 = vmax.f32 %v607_v17, 0.0  ;;  %v648_v59 = vld [vmem:[%s2294_s5 + $0x38] sm:$0xff] }
 0x1e7   :  { %v616_v12 = vpop.f32.mrf.mxu1 }
 0x1e8   :  { %v640_v14 = vmax.f32 %v622_v10, 0.0  ;;  %v617_v15 = vadd.f32 %v616_v12, %v473_v61  ;;  %v650_v61 = vld [vmem:[%s2294_s5 + $0x48] sm:$0xff]  ;;  %v751_v12 = vpop.permute.xlu0 %750 }
 0x1ea   :  { %v639_v18 = vmax.f32 %v617_v15, 0.0  ;;  %1558 = vmatprep.subr.mxu0 %v640_v14 }
 0x1eb   :  { %1559 = vmatpush3.msra.mxu0 %v640_v14  ;;  %v746_v14 = vpop.permute.xlu1 %745 }
 0x1ec   :  { %1560 = vmatprep.subr.mxu0 %v639_v18  ;;  %v741_v17 = vpop.permute.xlu0 %740 }
 0x1ed   :  { %1561 = vmatpush3.msra.mxu0 %v639_v18 }
 0x1ee   :  { %1562 = vmatprep.subr.mxu0 %v638_v20 }
 0x1ef   :  { %1563 = vmatpush3.msra.mxu0 %v638_v20  ;;  %v736_v19 = vpop.permute.xlu1 %735 }
 0x1f0   :  { %1564 = vmatprep.subr.mxu0 %v637_v23  ;;  %v731_v22 = vpop.permute.xlu0 %730 }
 0x1f1   :  { %1565 = vmatpush3.msra.mxu0 %v637_v23 }
 0x1f2   :  { %1566 = vmatprep.subr.mxu0 %v636_v26 }
 0x1f3   :  { %1567 = vmatpush3.msra.mxu0 %v636_v26  ;;  %v726_v24 = vpop.permute.xlu1 %725 }
 0x1f4   :  { %1568 = vmatprep.subr.mxu0 %v635_v28 }
 0x1f5   :  { %1569 = vmatpush3.msra.mxu0 %v635_v28  ;;  %v721_v28 = vpop.permute.xlu0 %720 }
 0x1f6   :  { %1570 = vmatprep.subr.mxu0 %v634_v31 }
 0x1f7   :  { %1571 = vmatpush3.msra.mxu0 %v634_v31  ;;  %v716_v33 = vpop.permute.xlu1 %715 }
 0x1f8   :  { %1572 = vmatprep.subr.mxu0 %v633_v34 }
 0x1f9   :  { %1573 = vmatpush3.msra.mxu0 %v633_v34  ;;  %v711_v37 = vpop.permute.xlu0 %710 }
 0x1fa   :  { %1574 = vmatprep.subr.mxu0 %v632_v36 }
 0x1fb   :  { %1575 = vmatpush3.msra.mxu0 %v632_v36  ;;  %v706_v41 = vpop.permute.xlu1 %705 }
 0x1fc   :  { %1576 = vmatprep.subr.mxu0 %v631_v38 }
 0x1fd   :  { %1577 = vmatpush3.msra.mxu0 %v631_v38  ;;  %v701_v46 = vpop.permute.xlu0 %700 }
 0x1fe   :  { %1578 = vmatprep.subr.mxu0 %v630_v42 }
 0x1ff   :  { %1579 = vmatpush3.msra.mxu0 %v630_v42  ;;  %v696_v49 = vpop.permute.xlu1 %695 }
 0x200   :  { %1580 = vmatprep.subr.mxu0 %v629_v44 }
 0x201   :  { %1581 = vmatpush3.msra.mxu0 %v629_v44 }
 0x202   :  { %1582 = vmatprep.subr.mxu0 %v628_v47 }
 0x203   :  { %1583 = vmatpush3.msra.mxu0 %v628_v47 }
 0x204   :  { %1584 = vmatprep.subr.mxu0 %v627_v50 }
 0x205   :  { %1585 = vmatpush3.msra.mxu0 %v627_v50 }
 0x206   :  { %1586 = vmatprep.subr.mxu0 %v626_v51 }
 0x207   :  { %1587 = vmatpush3.msra.mxu0 %v626_v51 }
 0x208   :  { %1588 = vmatprep.subr.mxu0 %v625_v52 }
 0x209   :  { %1589 = vmatpush3.msra.mxu0 %v625_v52 }
 0x20a   :  { %1591 = vmatmul.mubr.f32.vlgmr.msra.gmra.mxu0 %v642_v55 }
 0x20b   :  { %1593 = vmatprep.mubr.f32.mxu0 %v643_v53  ;;  %v691_v53 = vpop.permute.xlu0 %690 }
 0x20e   :  { %1594 = vmatmul.mubr.f32.gmra.mxu0 %v644_v54 }
 0x20f   :  { %1596 = vmatprep.mubr.f32.mxu0 %v645_v56 }
 0x212   :  { %1597 = vmatmul.mubr.f32.gmra.mxu0 %v646_v57  ;;  %v686_v57 = vpop.permute.xlu1 %685 }
 0x213   :  { %1599 = vmatprep.mubr.f32.mxu0 %v647_v58 }
 0x216   :  { %1600 = vmatmul.mubr.f32.gmra.mxu0 %v648_v59 }
 0x217   :  { %1602 = vmatprep.mubr.f32.mxu0 %v649_v60 }
 0x21a   :  { %1603 = vmatmul.mubr.f32.gmra.mxu0 %v650_v61 }
 0x21b   :  { %1605 = vmatprep.mubr.f32.mxu0 %v651_v62  ;;  %v681_v62 = vpop.permute.xlu0 %680 }
 0x21e   :  { %1606 = vmatmul.mubr.f32.gmra.mxu0 %v652_v63 }
 0x21f   :  { %1608 = vmatprep.mubr.f32.mxu0 %v653_v0 }
 0x222   :  { %1609 = vmatmul.mubr.f32.gmra.mxu0 %v654_v1  ;;  %v676_v1 = vpop.permute.xlu1 %675 }
 0x223   :  { %1611 = vmatprep.mubr.f32.mxu0 %v655_v2 }
 0x226   :  { %1612 = vmatmul.mubr.f32.gmra.mxu0 %v656_v3 }
 0x227   :  { %1646 = vmatprep.mubr.f32.mxu0 %v914_v4 }
 0x2ca   :  { %v2226_v6 = vpop.f32.mrf.mxu0 }
 0x2cb   :  { %v825_v63 = vadd.f32 %v2226_v6, %v681_v62  ;;  %v915_v6 = vld [vmem:[%s2296_s7 + $0x8] sm:$0xff] }
 0x2cc   :  { %v2228_v7 = vpop.f32.mrf.mxu0 }
 0x2cd   :  { %v820_v2 = vadd.f32 %v2228_v7, %v676_v1  ;;  %v899_v4 = vmax.f32 %v825_v63, 0.0  ;;  %v921_v7 = vld [vmem:[%s2296_s7 + $0x38] sm:$0xff] }
 0x2ce   :  { %v2230_v8 = vpop.f32.mrf.mxu0 }
 0x2cf   :  { %v835_v58 = vadd.f32 %v2230_v8, %v691_v53  ;;  %v898_v5 = vmax.f32 %v820_v2, 0.0  ;;  %v916_v8 = vld [vmem:[%s2296_s7 + $0x10] sm:$0xff] }
 0x2d0   :  { %v2232_v9 = vpop.f32.mrf.mxu0 }
 0x2d1   :  { %v830_v60 = vadd.f32 %v2232_v9, %v686_v57  ;;  %v901_v0 = vmax.f32 %v835_v58, 0.0  ;;  %v922_v9 = vld [vmem:[%s2296_s7 + $0x40] sm:$0xff] }
 0x2d2   :  { %v2234_v10 = vpop.f32.mrf.mxu0 }
 0x2d3   :  { %v845_v52 = vadd.f32 %v2234_v10, %v701_v46  ;;  %v900_v3 = vmax.f32 %v830_v60, 0.0  ;;  %v917_v10 = vld [vmem:[%s2296_s7 + $0x18] sm:$0xff] }
 0x2d4   :  { %v2236_v11 = vpop.f32.mrf.mxu0 }
 0x2d5   :  { %v840_v54 = vadd.f32 %v2236_v11, %v696_v49  ;;  %v903_v59 = vmax.f32 %v845_v52, 0.0  ;;  %v923_v11 = vld [vmem:[%s2296_s7 + $0x48] sm:$0xff] }
 0x2d6   :  { %v1601_v13 = vpop.f32.mrf.mxu0 }
 0x2d7   :  { %v855_v47 = vadd.f32 %v1601_v13, %v711_v37  ;;  %v902_v61 = vmax.f32 %v840_v54, 0.0  ;;  %v924_v13 = vld [vmem:[%s2296_s7 + $0x50] sm:$0xff] }
 0x2d8   :  { %v849_v15 = vpop.f32.mrf.mxu0 }
 0x2d9   :  { %v850_v50 = vadd.f32 %v849_v15, %v706_v41  ;;  %v905_v55 = vmax.f32 %v855_v47, 0.0  ;;  %v925_v15 = vld [vmem:[%s2296_s7 + $0x58] sm:$0xff] }
 0x2da   :  { %v1604_v16 = vpop.f32.mrf.mxu0 }
 0x2db   :  { %v865_v42 = vadd.f32 %v1604_v16, %v721_v28  ;;  %v904_v56 = vmax.f32 %v850_v50, 0.0  ;;  %v926_v16 = vld [vmem:[%s2296_s7 + $0x60] sm:$0xff] }
 0x2dc   :  { %v859_v18 = vpop.f32.mrf.mxu0 }
 0x2dd   :  { %v860_v44 = vadd.f32 %v859_v18, %v716_v33  ;;  %v907_v48 = vmax.f32 %v865_v42, 0.0  ;;  %v928_v18 = vld [vmem:[%s2296_s7 + $0x70] sm:$0xff] }
 0x2de   :  { %v1607_v20 = vpop.f32.mrf.mxu0 }
 0x2df   :  { %v875_v36 = vadd.f32 %v1607_v20, %v731_v22  ;;  %v906_v51 = vmax.f32 %v860_v44, 0.0  ;;  %v949_v20 = vpop.permute.xlu0 %948 }
 0x2e0   :  { %v869_v21 = vpop.f32.mrf.mxu0 }
 0x2e1   :  { %v870_v38 = vadd.f32 %v869_v21, %v726_v24  ;;  %v909_v43 = vmax.f32 %v875_v36, 0.0  ;;  %v954_v21 = vpop.permute.xlu1 %953 }
 0x2e2   :  { %v1610_v23 = vpop.f32.mrf.mxu0 }
 0x2e3   :  { %v885_v30 = vadd.f32 %v1610_v23, %v741_v17  ;;  %v908_v45 = vmax.f32 %v870_v38, 0.0  ;;  %v927_v17 = vld [vmem:[%s2296_s7 + $0x68] sm:$0xff]  ;;  %v959_v22 = vpop.permute.xlu0 %958 }
 0x2e4   :  { %v879_v25 = vpop.f32.mrf.mxu0 }
 0x2e5   :  { %v880_v34 = vadd.f32 %v879_v25, %v736_v19  ;;  %v911_v39 = vmax.f32 %v885_v30, 0.0  ;;  %v929_v19 = vld [vmem:[%s2296_s7 + $0x78] sm:$0xff]  ;;  %v964_v23 = vpop.permute.xlu1 %963 }
 0x2e6   :  { %v1613_v26 = vpop.f32.mrf.mxu0 }
 0x2e7   :  { %v895_v27 = vadd.f32 %v1613_v26, %v751_v12  ;;  %v910_v40 = vmax.f32 %v880_v34, 0.0  ;;  %v918_v12 = vld [vmem:[%s2296_s7 + $0x20] sm:$0xff]  ;;  %v969_v24 = vpop.permute.xlu0 %968 }
 0x2e8   :  { %v889_v29 = vpop.f32.mrf.mxu0 }
 0x2e9   :  { %v913_v31 = vmax.f32 %v895_v27, 0.0  ;;  %v890_v32 = vadd.f32 %v889_v29, %v746_v14  ;;  %v919_v14 = vld [vmem:[%s2296_s7 + $0x28] sm:$0xff]  ;;  %v974_v25 = vpop.permute.xlu1 %973  ;;  %s1729_s7 = smov [#allocation3]  }
 0x2ea   :  { %s1338_s14 = sshll.u32 %s1729_s7, 4  ;;  %s1339_s14 = int_to_ptr.vmem [resolvable:$true] %s1338_s14 }
 0x2eb   :  { %v912_v35 = vmax.f32 %v890_v32, 0.0  ;;  %1614 = vmatprep.subr.mxu0 %v913_v31  ;;  %1670 = vmatprep.subr.mxu1 %v913_v31  ;;  %v1206_v26 = vpop.permute.xlu0 %1205  ;;  %s1706_s5 = scalar_lea.vmem %s1339_s14, 16  ;;  %s1710_s15 = scalar_lea.vmem %s1339_s14, 32 }
 0x2ec   :  { %1615 = vmatpush3.msra.mxu0 %v913_v31  ;;  %1686 = vmatpush3.msra.mxu1 %v913_v31  ;;  %p1707_p0 = scmp.ne.s32.totalorder %s1339_s14, %s1706_s5  ;;  %p1711_p1 = scmp.lt.s32.totalorder %s1339_s14, %s1339_s14 }
 0x2ed   :  { %1616 = vmatprep.subr.mxu0 %v912_v35  ;;  %1671 = vmatprep.subr.mxu1 %v912_v35  ;;  %v1211_v27 = vpop.permute.xlu1 %1210  ;;  %p1712_p2 = scmp.lt.s32.totalorder %s1710_s15, %s1706_s5 }
 0x2ee   :  { %1617 = vmatpush3.msra.mxu0 %v912_v35  ;;  %1687 = vmatpush3.msra.mxu1 %v912_v35 }
 0x2ef   :  { %1618 = vmatprep.subr.mxu0 %v911_v39  ;;  %1672 = vmatprep.subr.mxu1 %v911_v39  ;;  %v1216_v28 = vpop.permute.xlu0 %1215  ;;  %p1713_p3 = por %p1712_p2, %p1711_p1 }
 0x2f0   :  { %1619 = vmatpush3.msra.mxu0 %v911_v39  ;;  %1688 = vmatpush3.msra.mxu1 %v911_v39 }
 0x2f1   :  { %1620 = vmatprep.subr.mxu0 %v910_v40  ;;  %1673 = vmatprep.subr.mxu1 %v910_v40  ;;  %v1221_v29 = vpop.permute.xlu1 %1220  ;;  %p1714_p4 = pnand %p1713_p3, %p1707_p0 }
 0x2f2   :  { %1621 = vmatpush3.msra.mxu0 %v910_v40  ;;  %1689 = vmatpush3.msra.mxu1 %v910_v40 }
 0x2f3   :  { %1622 = vmatprep.subr.mxu0 %v909_v43  ;;  %1674 = vmatprep.subr.mxu1 %v909_v43  ;;  %v979_v30 = vpop.permute.xlu0 %978 }
 0x2f4   :  { %1623 = vmatpush3.msra.mxu0 %v909_v43  ;;  %1690 = vmatpush3.msra.mxu1 %v909_v43 }
 0x2f5   :  { %1624 = vmatprep.subr.mxu0 %v908_v45  ;;  %1675 = vmatprep.subr.mxu1 %v908_v45  ;;  %v1226_v31 = vpop.permute.xlu1 %1225 }
 0x2f6   :  { %1625 = vmatpush3.msra.mxu0 %v908_v45  ;;  %1691 = vmatpush3.msra.mxu1 %v908_v45 }
 0x2f7   :  { %1626 = vmatprep.subr.mxu0 %v907_v48  ;;  %1676 = vmatprep.subr.mxu1 %v907_v48  ;;  %v984_v32 = vpop.permute.xlu0 %983 }
 0x2f8   :  { %1627 = vmatpush3.msra.mxu0 %v907_v48  ;;  %1692 = vmatpush3.msra.mxu1 %v907_v48 }
 0x2f9   :  { %1628 = vmatprep.subr.mxu0 %v906_v51  ;;  %1677 = vmatprep.subr.mxu1 %v906_v51  ;;  %v1231_v33 = vpop.permute.xlu1 %1230 }
 0x2fa   :  { %1629 = vmatpush3.msra.mxu0 %v906_v51  ;;  %1693 = vmatpush3.msra.mxu1 %v906_v51 }
 0x2fb   :  { %1630 = vmatprep.subr.mxu0 %v905_v55  ;;  %1678 = vmatprep.subr.mxu1 %v905_v55  ;;  %v989_v34 = vpop.permute.xlu0 %988 }
 0x2fc   :  { %1631 = vmatpush3.msra.mxu0 %v905_v55  ;;  %1694 = vmatpush3.msra.mxu1 %v905_v55 }
 0x2fd   :  { %1632 = vmatprep.subr.mxu0 %v904_v56  ;;  %1679 = vmatprep.subr.mxu1 %v904_v56  ;;  %v1236_v35 = vpop.permute.xlu1 %1235 }
 0x2fe   :  { %1633 = vmatpush3.msra.mxu0 %v904_v56  ;;  %1695 = vmatpush3.msra.mxu1 %v904_v56 }
 0x2ff   :  { %1634 = vmatprep.subr.mxu0 %v903_v59  ;;  %1680 = vmatprep.subr.mxu1 %v903_v59  ;;  %v994_v36 = vpop.permute.xlu0 %993 }
 0x300   :  { %1635 = vmatpush3.msra.mxu0 %v903_v59  ;;  %1696 = vmatpush3.msra.mxu1 %v903_v59 }
 0x301   :  { %1636 = vmatprep.subr.mxu0 %v902_v61  ;;  %1681 = vmatprep.subr.mxu1 %v902_v61  ;;  %v1241_v39 = vpop.permute.xlu1 %1240 }
 0x302   :  { %1637 = vmatpush3.msra.mxu0 %v902_v61  ;;  %1697 = vmatpush3.msra.mxu1 %v902_v61 }
 0x303   :  { %1638 = vmatprep.subr.mxu0 %v901_v0  ;;  %1682 = vmatprep.subr.mxu1 %v901_v0  ;;  %v999_v37 = vpop.permute.xlu0 %998 }
 0x304   :  { %1639 = vmatpush3.msra.mxu0 %v901_v0  ;;  %1698 = vmatpush3.msra.mxu1 %v901_v0 }
 0x305   :  { %1640 = vmatprep.subr.mxu0 %v900_v3  ;;  %1683 = vmatprep.subr.mxu1 %v900_v3  ;;  %v1246_v38 = vpop.permute.xlu1 %1245 }
 0x306   :  { %1641 = vmatpush3.msra.mxu0 %v900_v3  ;;  %1699 = vmatpush3.msra.mxu1 %v900_v3 }
 0x307   :  { %1642 = vmatprep.subr.mxu0 %v899_v4  ;;  %1684 = vmatprep.subr.mxu1 %v899_v4  ;;  %v1004_v45 = vpop.permute.xlu0 %1003 }
 0x308   :  { %1643 = vmatpush3.msra.mxu0 %v899_v4  ;;  %1700 = vmatpush3.msra.mxu1 %v899_v4 }
 0x309   :  { %1644 = vmatprep.subr.mxu0 %v898_v5  ;;  %1685 = vmatprep.subr.mxu1 %v898_v5  ;;  %v1251_v49 = vpop.permute.xlu1 %1250 }
 0x30a   :  { %1645 = vmatpush3.msra.mxu0 %v898_v5  ;;  %1701 = vmatpush3.msra.mxu1 %v898_v5 }
 0x30b   :  { %1647 = vmatmul.mubr.f32.vlgmr.msra.gmra.mxu0 %v915_v6  ;;  %1656 = vmatmul.mubr.f32.vlgmr.msra.gmra.mxu1 %v921_v7  ;;  %v1009_v59 = vpop.permute.xlu0 %1008 }
 0x30c   :  { %1649 = vmatprep.mubr.f32.mxu0 %v916_v8  ;;  %1658 = vmatprep.mubr.f32.mxu1 %v922_v9 }
 0x30d   :  { %v1256_v6 = vpop.permute.xlu1 %1255 }
 0x30f   :  { %1650 = vmatmul.mubr.f32.gmra.mxu0 %v917_v10  ;;  %1659 = vmatmul.mubr.f32.gmra.mxu1 %v923_v11 }
 0x310   :  { %1652 = vmatprep.mubr.f32.mxu0 %v918_v12  ;;  %1661 = vmatprep.mubr.f32.mxu1 %v924_v13 }
 0x313   :  { %1653 = vmatmul.mubr.f32.gmra.mxu0 %v919_v14  ;;  %1662 = vmatmul.mubr.f32.gmra.mxu1 %v925_v15 }
 0x314   :  { %1664 = vmatprep.mubr.f32.mxu1 %v926_v16 }
 0x317   :  { %1665 = vmatmul.mubr.f32.gmra.mxu1 %v927_v17  ;;  %v1014_v17 = vpop.permute.xlu0 %1013 }
 0x318   :  { %1667 = vmatprep.mubr.f32.mxu1 %v928_v18 }
 0x31b   :  { %1668 = vmatmul.mubr.f32.gmra.mxu1 %v929_v19 }
 0x3cb   :  { %v1648_v40 = vpop.f32.mrf.mxu0  ;;  %v1657_v41 = vpop.f32.mrf.mxu1 }
 0x3cc   :  { %v1098_v42 = vadd.f32 %v1648_v40, %v954_v21  ;;  %v1128_v7 = vadd.f32 %v1657_v41, %v984_v32  ;;  %v1019_v41 = vpop.permute.xlu0 %1018 }
 0x3cd   :  { %v1092_v43 = vpop.f32.mrf.mxu0  ;;  %v1122_v44 = vpop.f32.mrf.mxu1 }
 0x3ce   :  { %v1093_v46 = vadd.f32 %v1092_v43, %v949_v20  ;;  %v1172_v50 = vmax.f32 %v1098_v42, 0.0  ;;  %v1123_v3 = vadd.f32 %v1122_v44, %v979_v30  ;;  %v1178_v19 = vmax.f32 %v1128_v7, 0.0 }
 0x3cf   :  { %v1651_v47 = vpop.f32.mrf.mxu0  ;;  %v1660_v48 = vpop.f32.mrf.mxu1 }
 0x3d0   :  { %v1171_v51 = vmax.f32 %v1093_v46, 0.0  ;;  %v1108_v52 = vadd.f32 %v1651_v47, %v964_v23  ;;  %v1284_v60 = vmul.f32 %v1211_v27, %v1172_v50  ;;  %v1177_v13 = vmax.f32 %v1123_v3, 0.0  ;;  %v1261_v23 = vpop.permute.xlu1 %1260 }
 0x3d1   :  { %v1102_v55 = vpop.f32.mrf.mxu0  ;;  %v1132_v53 = vpop.f32.mrf.mxu1  ;;  %v1138_v20 = vadd.f32 %v1660_v48, %v994_v36 }
 0x3d2   :  { %v1283_v54 = vmul.f32 %v1206_v26, %v1171_v51  ;;  %v1103_v56 = vadd.f32 %v1102_v55, %v959_v22  ;;  %v1174_v61 = vmax.f32 %v1108_v52, 0.0  ;;  %v1133_v14 = vadd.f32 %v1132_v53, %v989_v34  ;;  %v1024_v52 = vpop.permute.xlu0 %1023 }
 0x3d3   :  { %v1654_v57 = vpop.f32.mrf.mxu0  ;;  %v1663_v58 = vpop.f32.mrf.mxu1  ;;  %v1180_v30 = vmax.f32 %v1138_v20, 0.0 }
 0x3d4   :  { %v1173_v62 = vmax.f32 %v1103_v56, 0.0  ;;  %v1118_v63 = vadd.f32 %v1654_v57, %v974_v25  ;;  %v1299_v2 = vadd.f32 %v1284_v60, %v1283_v54  ;;  %v1286_v9 = vmul.f32 %v1221_v29, %v1174_v61  ;;  %v1266_v44 = vpop.permute.xlu1 %1265 }
 0x3d5   :  { %v1112_v0 = vpop.f32.mrf.mxu0  ;;  %v1142_v1 = vpop.f32.mrf.mxu1  ;;  %v1289_v25 = vmul.f32 %v1236_v35, %v1177_v13  ;;  %v1290_v29 = vmul.f32 %v1241_v39, %v1178_v19  ;;  %v1148_v32 = vadd.f32 %v1663_v58, %v1004_v45  ;;  %v1292_v36 = vmul.f32 %v1251_v49, %v1180_v30 }
 0x3d6   :  { %v1285_v4 = vmul.f32 %v1216_v28, %v1173_v62  ;;  %v1113_v5 = vadd.f32 %v1112_v0, %v969_v24  ;;  %v1176_v11 = vmax.f32 %v1118_v63, 0.0  ;;  %v1179_v24 = vmax.f32 %v1133_v14, 0.0  ;;  %v1276_v49 = vpop.permute.xlu0 %1275 }
 0x3d7   :  { %v1666_v8 = vpop.f32.mrf.mxu1  ;;  %v1143_v27 = vadd.f32 %v1142_v1, %v999_v37 }
 0x3d8   :  { %v1300_v10 = vadd.f32 %v1299_v2, %v1285_v4  ;;  %v1175_v12 = vmax.f32 %v1113_v5, 0.0  ;;  %v1288_v21 = vmul.f32 %v1231_v33, %v1176_v11  ;;  %v1291_v34 = vmul.f32 %v1246_v38, %v1179_v24  ;;  %v1271_v54 = vpop.permute.xlu1 %1270 }
 0x3d9   :  { %v1152_v18 = vpop.f32.mrf.mxu1  ;;  %v1182_v33 = vmax.f32 %v1148_v32, 0.0  ;;  %v1158_v48 = vadd.f32 %v1666_v8, %v1014_v17  ;;  %v1326_v2 = vlaneseq }
 0x3da   :  { %v1287_v15 = vmul.f32 %v1226_v31, %v1175_v12  ;;  %v1301_v16 = vadd.f32 %v1300_v10, %v1286_v9  ;;  %v1181_v31 = vmax.f32 %v1143_v27, 0.0  ;;  %v1153_v43 = vadd.f32 %v1152_v18, %v1009_v59  ;;  %v1324_v10 = vpop.permute.xlu0 %1323 }
 0x3db   :  { %v1669_v28 = vpop.f32.mrf.mxu1  ;;  %v1294_v39 = vmul.f32 %v1261_v23, %v1182_v33  ;;  %v1184_v45 = vmax.f32 %v1158_v48, 0.0  ;;  %v1327_v5 = vshrl.u32 %v1326_v2, 7 }
 0x3dc   :  { %v1302_v22 = vadd.f32 %v1301_v16, %v1287_v15  ;;  %v1293_v35 = vmul.f32 %v1256_v6, %v1181_v31  ;;  %v1183_v51 = vmax.f32 %v1153_v43, 0.0  ;;  %v1168_v53 = vadd.f32 %v1669_v28, %v1024_v52  ;;  %v1281_v63 = vpop.permute.xlu1 %1280 }
 0x3dd   :  { %v1162_v46 = vpop.f32.mrf.mxu1  ;;  %v1296_v58 = vmul.f32 %v1271_v54, %v1184_v45  ;;  %v1328_v8 = vsub.s32 0, %v1327_v5 }
 0x3de   :  { %v1303_v26 = vadd.f32 %v1302_v22, %v1288_v21  ;;  %v1163_v37 = vadd.f32 %v1162_v46, %v1019_v41  ;;  %v1295_v38 = vmul.f32 %v1266_v44, %v1183_v51  ;;  %v1186_v60 = vmax.f32 %v1168_v53, 0.0 }
 0x3df   :  { %v1329_v12 = vrot.slane %v1324_v10, %v1328_v8 }
 0x3e0   :  { %v1304_v40 = vadd.f32 %v1303_v26, %v1289_v25  ;;  %v1185_v57 = vmax.f32 %v1163_v37, 0.0  ;;  %v1298_v0 = vmul.f32 %v1281_v63, %v1186_v60 }
 0x3e2   :  { %v1305_v42 = vadd.f32 %v1304_v40, %v1290_v29  ;;  %v1297_v61 = vmul.f32 %v1276_v49, %v1185_v57 }
 0x3e4   :  { %v1306_v47 = vadd.f32 %v1305_v42, %v1291_v34 }
 0x3e6   :  { %v1307_v50 = vadd.f32 %v1306_v47, %v1292_v36 }
 0x3e8   :  { %v1308_v55 = vadd.f32 %v1307_v50, %v1293_v35 }
 0x3ea   :  { %v1309_v56 = vadd.f32 %v1308_v55, %v1294_v39 }
 0x3ec   :  { %v1310_v59 = vadd.f32 %v1309_v56, %v1295_v38 }
 0x3ee   :  { %v1311_v62 = vadd.f32 %v1310_v59, %v1296_v58 }
 0x3f0   :  { %v1312_v1 = vadd.f32 %v1311_v62, %v1297_v61 }
 0x3f2   :  { %v1313_v3 = vadd.f32 %v1312_v1, %v1298_v0 }
 0x3f4   :  { %v1314_v4 = vrot.slane %v1313_v3, 4 }
 0x3f6   :  { %v1315_v6 = vadd.f32 %v1314_v4, %v1313_v3 }
 0x3f8   :  { %v1316_v7 = vrot.slane %v1315_v6, 2 }
 0x3fa   :  { %v1317_v9 = vadd.f32 %v1316_v7, %v1315_v6 }
 0x3fc   :  { %v1318_v11 = vrot.slane %v1317_v9, 1 }
 0x3fe   :  { %v1319_v13 = vadd.f32 %v1318_v11, %v1317_v9 }
 0x400   :  { %v1330_v14 = vadd.f32 %v1329_v12, %v1319_v13 }
 0x402   :  { %1331 = vst [vmem:[#allocation3] sm:$0x1] %v1330_v14 }
 0x403   :  { %1717 = shalt.err (!%p1714_p4)
}
 0x404   :  { %1341 = dma.vmem_to_hbm [thread:$0]  %s1339_s14, 16, %s2300_s11, [#allocation4]  }
 0x405   :  { %1726 = dma.done.wait [#allocation4], 16  }
 0x406   :  { %1727 = vsyncadd [#allocation4], 4294967280 }
 0x407   :  { %1345 = vsyncpa [#allocation4], 1 }

</bundles_post_ra>
